<compile_context>
chip_gen: v5e
topology: v5e:2x2
jax: 0.10.0
libtpu: 0.0.40
codegen_flags: <defaults>
</compile_context>

<pallas_src>
import jax
import jax.numpy as jnp
import numpy as np
from jax.experimental import pallas as pl
from jax.experimental.pallas import tpu as pltpu

BATCH = 2
WINDOW = 16       # window_size
N_FEATURES = 8    # n_features
NEG_SLOPE = 0.2   # GATConv default negative_slope (module's `alpha` is never forwarded to GATConv)


# ---------------------------------------------------------------------------
# Fused kernel: GATConv(window,window) + ReLU + GCNConv(F,F)(mean form) + ReLU
# ---------------------------------------------------------------------------
def stgat_fused_kernel(x_ref, wg_t_ref, a_proj_ref, bg_ref, wc_t_ref, bc_ref, o_ref):
    """One batch element per grid step.

    x_ref:      (1, F, W)    nodes = features, node feature vec = window
    wg_t_ref:   (W_in, W_out)   GAT lin weight, pre-transposed
    a_proj_ref: (W_in, 2)       [a_src @ Wg ; a_dst @ Wg].T  (folded attention vectors)
    bg_ref:     (1, W_out)      GAT bias
    wc_t_ref:   (F_in, F_out)   GCN weight, pre-transposed
    bc_ref:     (1, F_out)      GCN bias
    o_ref:      (1, 1, F_out)   GCN row (identical for every time step before the view gymnastics)
    """
    X = x_ref[0]                                                           # (F, W_in)

    # --- GAT over the fully-connected feature graph (+ self loops) ---
    H = jnp.dot(X, wg_t_ref[...], preferred_element_type=jnp.float32)     # (F, W_out)
    SD = jnp.dot(X, a_proj_ref[...], preferred_element_type=jnp.float32)  # (F, 2): [s_j, d_i]
    e = SD[:, 1:2] + SD[:, 0:1].T                                          # e[i, j] = d_i + s_j
    e = jnp.where(e > 0, e, NEG_SLOPE * e)                                 # LeakyReLU(0.2)
    e = e - jnp.max(e, axis=-1, keepdims=True)                             # stable softmax over j
    p = jnp.exp(e)
    attn = p * pl.reciprocal(jnp.sum(p, axis=-1, keepdims=True), approx=True)
    f_out = jnp.dot(attn, H, preferred_element_type=jnp.float32) + bg_ref[...]
    f_out = jnp.maximum(f_out, 0.0)                                        # F.relu, (F, W)

    # --- GCN over the fully-connected temporal graph (+ self loops): sym-normalized adjacency
    # is 1/W everywhere -> per-batch mean over time.  mean_w(Z @ Wc.T) == mean_w(Z) @ Wc.T, so
    # no (F,W)->(W,F) transpose is needed: reduce the window axis first, then project.
    fmean = jnp.mean(f_out, axis=-1, keepdims=True)                        # (F, 1)
    m = jnp.sum(fmean * wc_t_ref[...], axis=0, keepdims=True) + bc_ref[...]  # (1, F_out)
    o_ref[0] = jnp.maximum(m, 0.0).astype(o_ref.dtype)                     # F.relu


# ---------------------------------------------------------------------------
# Wrapper
# ---------------------------------------------------------------------------
def _param_spec(shape):
    # whole (un-batched) parameter, same block for every grid step
    return pl.BlockSpec(shape, lambda b: (0,) * len(shape))


def stgat_block(data, fc_edge_index, tc_edge_index, params):
    """Mirrors StgatBlock.forward.  data: (B, window_size, n_features)."""
    del fc_edge_index, tc_edge_index  # kernel realizes the fully-connected batched graphs densely
    B, W, F = data.shape

    # x = data.permute(0, 2, 1) -> nodes = features
    x = jnp.transpose(data, (0, 2, 1))                                     # (B, F, W)

    # One-time parameter massaging (hoisted out of the kernel):
    wg_t = params["gat_w"].T                                               # (W_in, W_out)
    a_proj = jnp.concatenate([params["gat_a_src"] @ params["gat_w"],       # s_j = X_j . (a_src@Wg)
                              params["gat_a_dst"] @ params["gat_w"]],      # d_i = X_i . (a_dst@Wg)
                             axis=0).T                                     # (W_in, 2)
    wc_t = params["gcn_w"].T                                               # (F_in, F_out)

    r = pl.pallas_call(
        stgat_fused_kernel,
        out_shape=jax.ShapeDtypeStruct((B, 1, F), data.dtype),
        grid=(B,),
        in_specs=[
            pl.BlockSpec((1, F, W), lambda b: (b, 0, 0)),
            _param_spec(wg_t.shape),
            _param_spec(a_proj.shape),
            _param_spec(params["gat_b"].shape),
            _param_spec(wc_t.shape),
            _param_spec(params["gcn_b"].shape),
        ],
        out_specs=pl.BlockSpec((1, 1, F), lambda b: (b, 0, 0)),
        compiler_params=pltpu.CompilerParams(dimension_semantics=("parallel",)),
    )(x, wg_t, a_proj, params["gat_b"], wc_t, params["gcn_b"])              # (B, 1, F)

    # GCN output is the same row for every time step; reproduce the module's
    # view(B, node_num, -1).permute(0, 2, 1) semantics exactly on the broadcast result.
    t_out = jnp.broadcast_to(r, (B, W, F))
    return jnp.transpose(t_out.reshape(B * W, F).reshape(B, F, W), (0, 2, 1))  # (B, W, F)


# ---------------------------------------------------------------------------
# Pure-JAX reference (same dense-graph semantics) for verification
# ---------------------------------------------------------------------------
def stgat_block_ref(data, params):
    B, W, F = data.shape
    x = jnp.transpose(data, (0, 2, 1))                                     # (B, F, W)
    H = jnp.einsum("bnw,ow->bno", x, params["gat_w"])
    s = jnp.sum(H * params["gat_a_src"][None], axis=-1)
    d = jnp.sum(H * params["gat_a_dst"][None], axis=-1)
    e = d[:, :, None] + s[:, None, :]
    e = jnp.where(e > 0, e, NEG_SLOPE * e)
    attn = jax.nn.softmax(e, axis=-1)
    f_out = jax.nn.relu(jnp.einsum("bij,bjo->bio", attn, H) + params["gat_b"])
    z = jnp.transpose(f_out, (0, 2, 1))                                    # (B, W, F)
    ZW = jnp.einsum("bwf,of->bwo", z, params["gcn_w"])
    t_out = jax.nn.relu(jnp.mean(ZW, axis=1, keepdims=True) + params["gcn_b"])
    t_out = jnp.broadcast_to(t_out, ZW.shape)
    return jnp.transpose(t_out.reshape(B * W, F).reshape(B, F, W), (0, 2, 1))


# ---------------------------------------------------------------------------
def make_params(key):
    ks = jax.random.split(key, 6)
    return {
        # GATConv(window_size, window_size): lin weight (out, in), att (1, out), bias (out,)
        "gat_w": jax.random.normal(ks[0], (WINDOW, WINDOW), jnp.float32) * 0.2,
        "gat_a_src": jax.random.normal(ks[1], (1, WINDOW), jnp.float32) * 0.2,
        "gat_a_dst": jax.random.normal(ks[2], (1, WINDOW), jnp.float32) * 0.2,
        "gat_b": jax.random.normal(ks[3], (1, WINDOW), jnp.float32) * 0.1,
        # GCNConv(n_features, n_features): weight (out, in), bias (out,)
        "gcn_w": jax.random.normal(ks[4], (N_FEATURES, N_FEATURES), jnp.float32) * 0.2,
        "gcn_b": jax.random.normal(ks[5], (1, N_FEATURES), jnp.float32) * 0.1,
    }


def make_fc_edge_index(num_nodes, batch):
    """Fully-connected (no self-loop) graph per batch element, offset like get_batch_edge_index."""
    src, dst = [], []
    for b in range(batch):
        off = b * num_nodes
        for i in range(num_nodes):
            for j in range(num_nodes):
                if i != j:
                    src.append(off + j)
                    dst.append(off + i)
    return jnp.array([src, dst], dtype=jnp.int32)


if __name__ == "__main__":
    key = jax.random.PRNGKey(0)
    k_data, k_param = jax.random.split(key)
    data = jax.random.normal(k_data, (BATCH, WINDOW, N_FEATURES), jnp.float32)
    params = make_params(k_param)
    fc_edge_index = make_fc_edge_index(N_FEATURES, BATCH)   # (2, B*F*(F-1)) — implied dense in-kernel
    tc_edge_index = make_fc_edge_index(WINDOW, BATCH)       # (2, B*W*(W-1)) — implied dense in-kernel

    fwd = jax.jit(stgat_block)
    out = fwd(data, fc_edge_index, tc_edge_index, params)
    out = jax.block_until_ready(out)

    ref = stgat_block_ref(data, params)
    # approx-reciprocal softmax normalization -> slightly looser tolerance than exact divide
    np.testing.assert_allclose(np.asarray(out), np.asarray(ref), rtol=5e-3, atol=5e-3)
    assert out.shape == (BATCH, WINDOW, N_FEATURES)
    print("KERNEL_OK")
</pallas_src>

<mosaic_0001>
module attributes {stable_mosaic.version = 11 : i64} {
  func.func @stgat_fused_kernel(%arg0: i32, %arg1: memref<1x8x16xf32, #tpu.memory_space<vmem>>, %arg2: memref<16x16xf32, #tpu.memory_space<vmem>>, %arg3: memref<16x2xf32, #tpu.memory_space<vmem>>, %arg4: memref<1x16xf32, #tpu.memory_space<vmem>>, %arg5: memref<8x8xf32, #tpu.memory_space<vmem>>, %arg6: memref<1x8xf32, #tpu.memory_space<vmem>>, %arg7: memref<1x1x8xf32, #tpu.memory_space<vmem>>) attributes {dimension_semantics = [#tpu.dimension_semantics<parallel>], iteration_bounds = array<i64: 2>, scalar_prefetch = 0 : i64, scratch_operands = 0 : i64, tpu.core_type = #tpu.core_type<tc>, window_params = [{transform_indices = @transform_0, window_bounds = array<i64: 1, 8, 16>}, {pipeline_mode = #tpu.pipeline_mode<synchronous>, transform_indices = @transform_1, window_bounds = array<i64: 16, 16>}, {pipeline_mode = #tpu.pipeline_mode<synchronous>, transform_indices = @transform_2, window_bounds = array<i64: 16, 2>}, {pipeline_mode = #tpu.pipeline_mode<synchronous>, transform_indices = @transform_3, window_bounds = array<i64: 1, 16>}, {pipeline_mode = #tpu.pipeline_mode<synchronous>, transform_indices = @transform_4, window_bounds = array<i64: 8, 8>}, {pipeline_mode = #tpu.pipeline_mode<synchronous>, transform_indices = @transform_5, window_bounds = array<i64: 1, 8>}, {transform_indices = @transform_6, window_bounds = array<i64: 1, 1, 8>}]} {
    %c0 = arith.constant 0 : index
    %c0_0 = arith.constant 0 : index
    %c0_1 = arith.constant 0 : index
    %0 = vector.load %arg1[%c0, %c0_0, %c0_1] : memref<1x8x16xf32, #tpu.memory_space<vmem>>, vector<1x8x16xf32>
    %1 = vector.shape_cast %0 : vector<1x8x16xf32> to vector<8x16xf32>
    %c0_2 = arith.constant 0 : index
    %c0_3 = arith.constant 0 : index
    %2 = vector.load %arg2[%c0_2, %c0_3] : memref<16x16xf32, #tpu.memory_space<vmem>>, vector<16x16xf32>
    %cst = arith.constant dense<0.000000e+00> : vector<8x16xf32>
    %3 = tpu.matmul %1, %2, %cst {dimension_numbers = #tpu.dot_dimension_numbers<[1], [0], [0], [1], [0, 0, 1, 1], [], []>} : vector<8x16xf32>, vector<16x16xf32>, vector<8x16xf32> -> vector<8x16xf32>
    %c0_4 = arith.constant 0 : index
    %c0_5 = arith.constant 0 : index
    %4 = vector.load %arg3[%c0_4, %c0_5] : memref<16x2xf32, #tpu.memory_space<vmem>>, vector<16x2xf32>
    %cst_6 = arith.constant dense<0.000000e+00> : vector<8x2xf32>
    %5 = tpu.matmul %1, %4, %cst_6 {dimension_numbers = #tpu.dot_dimension_numbers<[1], [0], [0], [1], [0, 0, 1, 1], [], []>} : vector<8x16xf32>, vector<16x2xf32>, vector<8x2xf32> -> vector<8x2xf32>
    %6 = vector.extract_strided_slice %5 {offsets = [0, 1], sizes = [8, 1], strides = [1, 1]} : vector<8x2xf32> to vector<8x1xf32>
    %7 = vector.extract_strided_slice %5 {offsets = [0, 0], sizes = [8, 1], strides = [1, 1]} : vector<8x2xf32> to vector<8x1xf32>
    %8 = tpu.transpose %7, [1, 0] : vector<8x1xf32> -> vector<1x8xf32>
    %9 = vector.broadcast %6 : vector<8x1xf32> to vector<8x8xf32>
    %10 = vector.broadcast %8 : vector<1x8xf32> to vector<8x8xf32>
    %11 = arith.addf %9, %10 : vector<8x8xf32>
    %cst_7 = arith.constant 0.000000e+00 : f32
    %12 = vector.broadcast %cst_7 : f32 to vector<8x8xf32>
    %13 = arith.cmpf ogt, %11, %12 : vector<8x8xf32>
    %cst_8 = arith.constant 2.000000e-01 : f32
    %14 = vector.broadcast %cst_8 : f32 to vector<8x8xf32>
    %15 = arith.mulf %14, %11 : vector<8x8xf32>
    %16 = arith.select %13, %11, %15 : vector<8x8xi1>, vector<8x8xf32>
    %cst_9 = arith.constant dense<0xFF800000> : vector<8xf32>
    %17 = vector.multi_reduction <maximumf>, %16, %cst_9 [1] : vector<8x8xf32> to vector<8xf32>
    %18 = vector.shape_cast %17 : vector<8xf32> to vector<8x1xf32>
    %19 = vector.broadcast %18 : vector<8x1xf32> to vector<8x8xf32>
    %20 = arith.subf %16, %19 : vector<8x8xf32>
    %21 = math.exp %20 : vector<8x8xf32>
    %cst_10 = arith.constant dense<0.000000e+00> : vector<8xf32>
    %22 = vector.multi_reduction <add>, %21, %cst_10 [1] : vector<8x8xf32> to vector<8xf32>
    %23 = vector.shape_cast %22 : vector<8xf32> to vector<8x1xf32>
    %24 = tpu.reciprocal %23 {approx = true} : vector<8x1xf32> -> vector<8x1xf32>
    %25 = vector.broadcast %24 : vector<8x1xf32> to vector<8x8xf32>
    %26 = arith.mulf %21, %25 : vector<8x8xf32>
    %cst_11 = arith.constant dense<0.000000e+00> : vector<8x16xf32>
    %27 = tpu.matmul %26, %3, %cst_11 {dimension_numbers = #tpu.dot_dimension_numbers<[1], [0], [0], [1], [0, 0, 1, 1], [], []>} : vector<8x8xf32>, vector<8x16xf32>, vector<8x16xf32> -> vector<8x16xf32>
    %c0_12 = arith.constant 0 : index
    %c0_13 = arith.constant 0 : index
    %28 = vector.load %arg4[%c0_12, %c0_13] : memref<1x16xf32, #tpu.memory_space<vmem>>, vector<1x16xf32>
    %29 = vector.broadcast %28 : vector<1x16xf32> to vector<8x16xf32>
    %30 = arith.addf %27, %29 : vector<8x16xf32>
    %cst_14 = arith.constant 0.000000e+00 : f32
    %31 = vector.broadcast %cst_14 : f32 to vector<8x16xf32>
    %32 = arith.maximumf %30, %31 : vector<8x16xf32>
    %cst_15 = arith.constant dense<0.000000e+00> : vector<8xf32>
    %33 = vector.multi_reduction <add>, %32, %cst_15 [1] : vector<8x16xf32> to vector<8xf32>
    %34 = vector.shape_cast %33 : vector<8xf32> to vector<8x1xf32>
    %cst_16 = arith.constant 1.600000e+01 : f32
    %35 = vector.broadcast %cst_16 : f32 to vector<8x1xf32>
    %36 = arith.divf %34, %35 : vector<8x1xf32>
    %c0_17 = arith.constant 0 : index
    %c0_18 = arith.constant 0 : index
    %37 = vector.load %arg5[%c0_17, %c0_18] : memref<8x8xf32, #tpu.memory_space<vmem>>, vector<8x8xf32>
    %38 = vector.broadcast %36 : vector<8x1xf32> to vector<8x8xf32>
    %39 = arith.mulf %38, %37 : vector<8x8xf32>
    %cst_19 = arith.constant dense<0.000000e+00> : vector<8xf32>
    %40 = vector.multi_reduction <add>, %39, %cst_19 [0] : vector<8x8xf32> to vector<8xf32>
    %41 = vector.shape_cast %40 : vector<8xf32> to vector<1x8xf32>
    %c0_20 = arith.constant 0 : index
    %c0_21 = arith.constant 0 : index
    %42 = vector.load %arg6[%c0_20, %c0_21] : memref<1x8xf32, #tpu.memory_space<vmem>>, vector<1x8xf32>
    %43 = arith.addf %41, %42 : vector<1x8xf32>
    %cst_22 = arith.constant 0.000000e+00 : f32
    %44 = vector.broadcast %cst_22 : f32 to vector<1x8xf32>
    %45 = arith.maximumf %43, %44 : vector<1x8xf32>
    %c0_23 = arith.constant 0 : index
    %c0_24 = arith.constant 0 : index
    %c0_25 = arith.constant 0 : index
    %46 = vector.load %arg7[%c0_23, %c0_24, %c0_25] : memref<1x1x8xf32, #tpu.memory_space<vmem>>, vector<1x1x8xf32>
    %47 = vector.shape_cast %46 : vector<1x1x8xf32> to vector<1x8xf32>
    %48 = vector.shape_cast %45 : vector<1x8xf32> to vector<1x1x8xf32>
    tpu.vector_store %arg7[%c0_23, %c0_24, %c0_25], %48 {strides = array<i32>} : memref<1x1x8xf32, #tpu.memory_space<vmem>>, vector<1x1x8xf32>,
    return
  }
  func.func @transform_0(%arg0: i32) -> (i32, i32, i32) {
    %c0_i32 = arith.constant 0 : i32
    %c0_i32_0 = arith.constant 0 : i32
    %c0_i32_1 = arith.constant 0 : i32
    return %arg0, %c0_i32, %c0_i32_0 : i32, i32, i32
  }
  func.func @transform_1(%arg0: i32) -> (i32, i32) {
    %c0_i32 = arith.constant 0 : i32
    %c0_i32_0 = arith.constant 0 : i32
    %c0_i32_1 = arith.constant 0 : i32
    return %c0_i32, %c0_i32_0 : i32, i32
  }
  func.func @transform_2(%arg0: i32) -> (i32, i32) {
    %c0_i32 = arith.constant 0 : i32
    %c0_i32_0 = arith.constant 0 : i32
    %c0_i32_1 = arith.constant 0 : i32
    return %c0_i32, %c0_i32_0 : i32, i32
  }
  func.func @transform_3(%arg0: i32) -> (i32, i32) {
    %c0_i32 = arith.constant 0 : i32
    %c0_i32_0 = arith.constant 0 : i32
    %c0_i32_1 = arith.constant 0 : i32
    return %c0_i32, %c0_i32_0 : i32, i32
  }
  func.func @transform_4(%arg0: i32) -> (i32, i32) {
    %c0_i32 = arith.constant 0 : i32
    %c0_i32_0 = arith.constant 0 : i32
    %c0_i32_1 = arith.constant 0 : i32
    return %c0_i32, %c0_i32_0 : i32, i32
  }
  func.func @transform_5(%arg0: i32) -> (i32, i32) {
    %c0_i32 = arith.constant 0 : i32
    %c0_i32_0 = arith.constant 0 : i32
    %c0_i32_1 = arith.constant 0 : i32
    return %c0_i32, %c0_i32_0 : i32, i32
  }
  func.func @transform_6(%arg0: i32) -> (i32, i32, i32) {
    %c0_i32 = arith.constant 0 : i32
    %c0_i32_0 = arith.constant 0 : i32
    %c0_i32_1 = arith.constant 0 : i32
    return %arg0, %c0_i32, %c0_i32_0 : i32, i32, i32
  }
}

</mosaic_0001>

<bundles_post_ra>
// kernel: stgat_block.1
= control target key start
LH: loop header
LB: loop body
LE: loop exit
PB: predicated region body
PF: predicated region fallthrough
CT: control target
= control target key end

     0   :  { %s523_s21 = smov 0   ;;  %s572_s0 = inlined_call_operand.vmem [shape: f32[2,8,16], index: 0, kind: input, shape index: {}]   ;;  %s573_s1 = inlined_call_operand.vmem [shape: f32[16,16], index: 1, kind: input, shape index: {}]   ;;  %s574_s2 = inlined_call_operand.vmem [shape: f32[16,2], index: 2, kind: input, shape index: {}]   ;;  %s575_s3 = inlined_call_operand.vmem [shape: f32[1,16], index: 3, kind: input, shape index: {}]   ;;  %s576_s4 = inlined_call_operand.vmem [shape: f32[8,8], index: 4, kind: input, shape index: {}]   ;;  %s577_s5 = inlined_call_operand.vmem [shape: f32[1,8], index: 5, kind: input, shape index: {}]   ;;  %s578_s6 = inlined_call_operand.vmem [shape: f32[2,1,8], index: 6, kind: output, shape index: {}]  }
   0x1 LB: > { %s448_s22 = sadd.s32 4294967295, %s484_s21   ;;  %p452_p0 = scmp.ge.s32.totalorder %s484_s21, 1  ;;  %s484_s21 = sphi %s523_s21, %s16_s21  }
   0x2   : > { %p211_p1 = scmp.lt.s32.totalorder %s484_s21, 3 }
   0x4   : > { %p212_p2 = pnand %p452_p0, %p211_p1 }
   0x5   : > { %p238_p3 = scmp.lt.s32.totalorder (!%p212_p2), %s448_s22, 1 }
   0x6   : > { %215 = sbr.rel (%p212_p2) target bundleno = 876 (0x36c), region = 44 }
   0xb   : > { %v273_v0 = vld [vmem:[%s574_s2 + $0x8] sm:$0xff]  ;;  %v272_v1 = vld [vmem:[%s574_s2] sm:$0xff]  ;;  %v486_v2 = vmov 1   ;;  %s580_s22 = smov (!%p238_p3, %s448_s22), 1  ;;  %vm248_vm0 = vcmask 130048   ;;  %vm336_vm2 = vcmask 64512  }
   0xc   : > { %288 = vmatpush.msra.mxu1 %v273_v0  ;;  %470 = vset.pattern.permute.xlu0 %v486_v2  ;;  %s453_s27 = sshll.u32 %s580_s22, 3  ;;  %v247_v12 = vld [vmem:[%s573_s1 + $0x8] sm:$0xff]  ;;  %v246_v13 = vld [vmem:[%s573_s1] sm:$0xff]  ;;  %v487_v28 = vmov 16.0   ;;  %s244_s19 = scalar_lea.vmem %s578_s6, %s580_s22  ;;  %vm399_vm4 = vcmask 57344  }
   0xd   : > { %s241_s30 = scalar_lea.vmem %s572_s0, %s453_s27  ;;  %266 = vmatpush.msra.mxu0 %v247_v12  ;;  %v471_v23 = vld [vmem:[%s575_s3] ss:$0 sm:$0xff] }
   0xe   : > { %289 = vmatpush.msra.mxu1 %v272_v1  ;;  %v245_v3 = vld [vmem:[%s241_s30] sm:$0xff] }
   0xf   : > { %455 = vmatmul.msk.f32.vlgmr.msra.gmra.mxu1 %vm248_vm0, %v245_v3  ;;  %267 = vmatpush.msra.mxu0 %v246_v13  ;;  %v387_v35 = vld [vmem:[%s576_s4] sm:$0xff] }
  0x10   : > { %454 = vmatmul.msk.f32.vlgmr.msra.gmra.mxu0 %vm248_vm0, %v245_v3  ;;  %v396_v45 = vld [vmem:[%s577_s5] sm:$0x1] }
  0x8c   : > { %v291_v4 = vpop.f32.mrf.mxu1 }
  0x8d   : > { %328 = vperm.xlu0 %470, %v291_v4   ;;  %v269_v19 = vpop.f32.mrf.mxu0 }
  0x8e   : > { %370 = vmatpush.msra.mxu2 %v269_v19 }
  0xaf   : > { %294 = vxpose.xlu0.b32.start.end [1/1] (short) (narrow) %v291_v4, 8 }
  0xff   : > { %v329_v5 = vpop.permute.xlu0 %328 }
 0x153   : > { %v310_v6 = vpop.trf.xlu0 }
 0x154   : > { %v331_v7 = vperm.slane %v310_v6, 0 }
 0x156   : > { %v332_v8 = vadd.f32 %v331_v7, %v329_v5 }
 0x158   : > { %vm333_vm1 = vcmp.gt.f32.partialorder %v332_v8, 0.0  ;;  %v334_v9 = vmul.f32 0.2, %v332_v8 }
 0x15a   : > { %v335_v10 = vsel %vm333_vm1, %v332_v8, %v334_v9 }
 0x15b   : > { %v337_v11 = vsel %vm336_vm2, %v335_v10, -inf }
 0x15c   : > { %338 = vmax.xlane.f32.xlu1 %v337_v11 }
 0x1cf   : > { %v339_v14 = vpop.xlane.xlu1 %338 }
 0x1d0   : > { %v340_v15 = vsub.f32 %v335_v10, %v339_v14 }
 0x1d2   : > { %v341_v16 = vmul.f32 1.442695, %v340_v15 }
 0x1d4   : > { %472 = vpow2.f32 %v341_v16 }
 0x1da   : > { %v473_v17 = vpop.eup %472 }
 0x1db   : > { %v343_v18 = vsel %vm336_vm2, %v473_v17, 0.0 }
 0x1dc   : > { %344 = vadd.xlane.f32.xlu1 %v343_v18 }
 0x24f   : > { %v345_v20 = vpop.xlane.xlu1 %344 }
 0x250   : > { %474 = vrcp.f32 %v345_v20 }
 0x251   : > { %476 = vrcp.f32 %v487_v28 }
 0x256   : > { %v475_v21 = vpop.eup %474 }
 0x257   : > { %v347_v22 = vmul.f32 %v475_v21, %v473_v17  ;;  %v477_v29 = vpop.eup %476 }
 0x258   : > { %v380_v30 = vmul.f32 16.0, %v477_v29  ;;  %vm384_vm3 = vweird.f32 %v477_v29 }
 0x259   : > { %456 = vmatmul.msk.f32.vlgmr.msra.gmra.mxu2 %vm336_vm2, %v347_v22 }
 0x25a   : > { %v381_v31 = vsub.f32 1.0, %v380_v30 }
 0x25c   : > { %v382_v32 = vmul.f32 %v477_v29, %v381_v31 }
 0x25e   : > { %v383_v33 = vadd.f32 %v477_v29, %v382_v32 }
 0x260   : > { %v385_v34 = vsel %vm384_vm3, %v477_v29, %v383_v33 }
 0x2dc   : > { %v372_v24 = vpop.f32.mrf.mxu2 }
 0x2dd   : > { %v373_v25 = vadd.f32 %v471_v23, %v372_v24 }
 0x2df   : > { %v375_v26 = vmax.f32 %v373_v25, 0.0 }
 0x2e1   : > { %v376_v27 = vsel %vm248_vm0, %v375_v26, 0.0 }
 0x2e2   : > { %377 = vadd.xlane.f32.xlu2 %v376_v27 }
 0x355   : > { %v378_v36 = vpop.xlane.xlu2 %377 }
 0x356   : > { %v386_v37 = vmul.f32 %v385_v34, %v378_v36 }
 0x358   : > { %v388_v38 = vmul.f32 %v387_v35, %v386_v37 }
 0x35a   : > { %v389_v39 = vsel %vm336_vm2, %v388_v38, 0.0 }
 0x35b   : > { %v390_v40 = vrot.slane %v389_v39, 4 }
 0x35d   : > { %v391_v41 = vadd.f32 %v390_v40, %v389_v39 }
 0x35f   : > { %v392_v42 = vrot.slane %v391_v41, 2 }
 0x361   : > { %v393_v43 = vadd.f32 %v392_v42, %v391_v41 }
 0x363   : > { %v394_v44 = vrot.slane %v393_v43, 1 }
 0x365   : > { %v395_v46 = vadd.f32 %v394_v44, %v393_v43 }
 0x367   : > { %v397_v47 = vadd.f32 %v396_v45, %v395_v46 }
 0x369   : > { %v398_v48 = vmax.f32 %v397_v47, 0.0 }
 0x36b   : > { %400 = vst.msk [vmem:[%s244_s19] sm:$0x1] %vm399_vm4, %v398_v48 }
 0x36c PF: > { %s16_s21 = sadd.s32 1, %s484_s21  }
 0x36d   : > { %p13_p4 = scmp.ge.s32.totalorder %s16_s21, 4  }
 0x36f   :  { %15 = sbr.rel (!%p13_p4) target bundleno = 1 (0x1), region = 74 }

</bundles_post_ra>
